<compile_context>
chip_gen: v5e
topology: v5e:2x2
jax: 0.10.0
libtpu: 0.0.40
codegen_flags: <defaults>
</compile_context>

<pallas_src>
import functools

import jax
import jax.numpy as jnp
import numpy as np
from jax.experimental import pallas as pl
from jax.experimental.pallas import tpu as pltpu


def _gelu_tanh(x):
    # tanh-form GELU: tanh goes to the EUP (otherwise idle slot); max abs
    # error vs the exact erf GELU is ~4e-4.
    return 0.5 * x * (1.0 + jnp.tanh(0.7978845608028654 * (x + 0.044715 * (x * x * x))))


def ecca_kernel(x_ref, w1_ref, b1_ref, wdu1t_ref, bdu1_ref, wdu2t_ref,
                bdu2_ref, wdw_ref, bdw_ref, mask_ref, out_ref, *, W, HW, HWp):
    Bt, C, _ = x_ref.shape
    f32 = jnp.float32
    inv_hw = 1.0 / float(HW)

    # Weights / biases / masks: loaded and sliced exactly once per grid step.
    w1 = w1_ref[...]              # (C, C)
    b1 = b1_ref[...]              # (C, 1)   -> broadcasts over (Bt, C, HWp)
    wdu1t = wdu1t_ref[...]        # (C, Cr)  (transposed in the wrapper)
    bdu1 = bdu1_ref[...]          # (1, Cr)
    wdu2t = wdu2t_ref[...]        # (Cr, C)
    bdu2 = bdu2_ref[...]          # (1, C)
    wdw = wdw_ref[...]            # (C, 9), k = (dy+1)*3 + (dx+1)
    bdw = bdw_ref[...]            # (C, 1)
    cmask_l = mask_ref[0:1, :]    # (1, HWp): dx = -1 valid (w >= 1)
    cmask_r = mask_ref[1:2, :]    # dx = +1 valid (w <= W-2)
    rmask_u = mask_ref[2:3, :]    # dy = -1 valid (h >= 1)
    rmask_d = mask_ref[3:4, :]    # dy = +1 valid (h <= H-2)

    x = x_ref[...]                # (Bt, C, HWp)

    # ---- body[0]: 1x1 conv = one batched channel-mixing matmul on the MXU.
    w1b = jnp.broadcast_to(w1, (Bt, C, C))
    y1 = jnp.einsum("boc,bcp->bop", w1b, x, preferred_element_type=f32) + b1

    # ---- body[1]: GELU (tanh form, EUP).
    z = _gelu_tanh(y1)

    # ---- body[2]: CCALayer stats (std + mean over spatial, per batch/channel),
    # single pass: var = E[z^2] - mean^2.  Pad lanes are excluded from sums.
    if HWp != HW:
        zs = z * mask_ref[4:5, :]        # valid-position mask
    else:
        zs = z
    sum_z = jnp.sum(zs, axis=-1)          # (Bt, C)
    sum_z2 = jnp.sum(zs * z, axis=-1)     # (Bt, C) == sum of z^2 over valid
    mean = sum_z * inv_hw
    var = jnp.maximum(sum_z2 * inv_hw - mean * mean, 0.0)
    y = jnp.sqrt(var) + mean              # (Bt, C)

    # Squeeze-excite, batched over the block: two small MXU matmuls total.
    h1 = jnp.maximum(jnp.dot(y, wdu1t, preferred_element_type=f32) + bdu1, 0.0)
    attn = jax.nn.sigmoid(jnp.dot(h1, wdu2t, preferred_element_type=f32) + bdu2)

    # ---- body[3]: depthwise 3x3 'same' conv on z, separable roll form.
    # Boundary masks zero invalid neighbours (incl. roll wrap / pad columns).
    zl = pltpu.roll(z, shift=1 % HWp, axis=2) * cmask_l          # z(h, w-1)
    zr = pltpu.roll(z, shift=(HWp - 1) % HWp, axis=2) * cmask_r  # z(h, w+1)

    conv = rmask_u * pltpu.roll(                                  # dy = -1 taps
        wdw[:, 0:1] * zl + wdw[:, 1:2] * z + wdw[:, 2:3] * zr,
        shift=W % HWp, axis=2)
    conv = conv + rmask_d * pltpu.roll(                           # dy = +1 taps
        wdw[:, 6:7] * zl + wdw[:, 7:8] * z + wdw[:, 8:9] * zr,
        shift=(HWp - W) % HWp, axis=2)
    conv = conv + (wdw[:, 3:4] * zl + wdw[:, 4:5] * z + wdw[:, 5:6] * zr)

    # ---- channel attention (applied once, by linearity) + bias + residual.
    out_ref[...] = (attn[:, :, None] * conv + bdw + x).astype(out_ref.dtype)


def _boundary_masks(H, W, HWp):
    """(5, HWp) masks: [dx=-1, dx=+1, dy=-1, dy=+1, valid] validity per lane."""
    HW = H * W
    pos = np.arange(HWp)
    hh, ww = pos // W, pos % W
    valid = pos < HW
    m = np.stack([
        valid & (ww >= 1),
        valid & (ww <= W - 2),
        valid & (hh >= 1),
        valid & (hh <= H - 2),
        valid,
    ]).astype(np.float32)
    return jnp.asarray(m)


def _default_vmem_limit_bytes():
    """Generation-aware scoped-VMEM limit: ~3/4 of physical capacity."""
    try:
        cap = int(pltpu.get_tpu_info().vmem_capacity_bytes)
    except Exception:
        cap = 64 << 20            # conservative (v7x-sized) fallback
    return max(32 << 20, min(cap * 3 // 4, 100 << 20))


def _pick_batch_tile(B, C, HWp, vmem_limit_bytes):
    """Largest divisor of B whose x-block fits the per-step VMEM budget.

    Per grid step VMEM ~= 4x block (in + out, double-buffered) + ~5 block-sized
    f32 intermediates + small weights/masks, so the x-block gets ~1/12 of the
    limit.  >=1 MiB blocks already run at ~85% of the HBM roofline, so the
    budget is capped rather than maximized.  Keep several grid steps so both
    TensorCores get work and DMA overlaps compute.
    """
    budget = (vmem_limit_bytes - (4 << 20)) // 12
    budget = max(1 << 20, min(budget, 6 << 20))
    per_elem = C * HWp * 4
    bt = max(1, min(B, budget // max(per_elem, 1)))
    if B >= 2:
        bt = min(bt, max(1, B // min(B, 4)))
    while B % bt:
        bt -= 1
    return bt


def ecca_forward(x, params, *, batch_tile=None, vmem_limit_bytes=None):
    B, C, H, W = x.shape
    HW = H * W
    HWp = max(128, ((HW + 127) // 128) * 128)   # lane-pad to a multiple of 128
    Cr = params["w_du1"].shape[0]

    if vmem_limit_bytes is None:
        vmem_limit_bytes = _default_vmem_limit_bytes()
    if batch_tile is None:
        batch_tile = _pick_batch_tile(B, C, HWp, vmem_limit_bytes)
    Bt = batch_tile
    assert B % Bt == 0

    x_flat = x.reshape(B, C, HW)
    if HWp != HW:
        x_flat = jnp.pad(x_flat, ((0, 0), (0, 0), (0, HWp - HW)))

    w_dw = params["w_dw"].reshape(C, 9)
    masks = _boundary_masks(H, W, HWp)

    kernel = functools.partial(ecca_kernel, W=W, HW=HW, HWp=HWp)
    out_flat = pl.pallas_call(
        kernel,
        out_shape=jax.ShapeDtypeStruct((B, C, HWp), x.dtype),
        grid_spec=pltpu.PrefetchScalarGridSpec(
            num_scalar_prefetch=0,
            grid=(B // Bt,),
            in_specs=[
                pl.BlockSpec((Bt, C, HWp), lambda i: (i, 0, 0)),  # x block
                pl.BlockSpec((C, C), lambda i: (0, 0)),           # w1 (1x1 conv)
                pl.BlockSpec((C, 1), lambda i: (0, 0)),           # b1
                pl.BlockSpec((C, Cr), lambda i: (0, 0)),          # w_du1^T
                pl.BlockSpec((1, Cr), lambda i: (0, 0)),          # b_du1
                pl.BlockSpec((Cr, C), lambda i: (0, 0)),          # w_du2^T
                pl.BlockSpec((1, C), lambda i: (0, 0)),           # b_du2
                pl.BlockSpec((C, 9), lambda i: (0, 0)),           # depthwise w
                pl.BlockSpec((C, 1), lambda i: (0, 0)),           # depthwise b
                pl.BlockSpec((5, HWp), lambda i: (0, 0)),         # boundary masks
            ],
            out_specs=pl.BlockSpec((Bt, C, HWp), lambda i: (i, 0, 0)),
        ),
        compiler_params=pltpu.CompilerParams(
            dimension_semantics=("parallel",),
            vmem_limit_bytes=int(vmem_limit_bytes)),
    )(x_flat, params["w1"], params["b1"],
      params["w_du1"].T, params["b_du1"].reshape(1, Cr),
      params["w_du2"].T, params["b_du2"].reshape(1, C),
      w_dw, params["b_dw"], masks)

    if HWp != HW:
        out_flat = out_flat[:, :, :HW]
    return out_flat.reshape(B, C, H, W)


def ecca_reference(x, params):
    """Pure-JAX reference of the PyTorch forward (exact erf GELU, HIGHEST)."""
    B, C, H, W = x.shape
    hp = jax.lax.Precision.HIGHEST
    y1 = jnp.einsum("oc,bchw->bohw", params["w1"], x, precision=hp) \
        + params["b1"].reshape(1, C, 1, 1)
    z = 0.5 * y1 * (1.0 + jax.scipy.special.erf(y1 * 0.7071067811865476))
    mean = jnp.mean(z, axis=(2, 3), keepdims=True)
    var = jnp.mean((z - mean) ** 2, axis=(2, 3), keepdims=True)
    y = jnp.sqrt(var) + mean
    h1 = jax.nn.relu(
        jnp.einsum("rc,bcij->brij", params["w_du1"], y, precision=hp)
        + params["b_du1"].reshape(1, -1, 1, 1))
    attn = jax.nn.sigmoid(
        jnp.einsum("cr,brij->bcij", params["w_du2"], h1, precision=hp)
        + params["b_du2"].reshape(1, C, 1, 1))
    zs = z * attn
    dw = params["w_dw"].reshape(C, 1, 3, 3)
    conv = jax.lax.conv_general_dilated(
        zs, dw, window_strides=(1, 1), padding="SAME",
        dimension_numbers=("NCHW", "OIHW", "NCHW"),
        feature_group_count=C, precision=hp) + params["b_dw"].reshape(1, C, 1, 1)
    return conv + x


if __name__ == "__main__":
    B, C, H, W = 2, 16, 16, 16
    reduction = 4
    Cr = C // reduction

    key = jax.random.PRNGKey(0)
    ks = jax.random.split(key, 9)
    params = {
        "w1": jax.random.normal(ks[0], (C, C), jnp.float32) * (1.0 / np.sqrt(C)),
        "b1": jax.random.normal(ks[1], (C, 1), jnp.float32) * 0.1,
        "w_du1": jax.random.normal(ks[2], (Cr, C), jnp.float32) * (1.0 / np.sqrt(C)),
        "b_du1": jax.random.normal(ks[3], (Cr, 1), jnp.float32) * 0.1,
        "w_du2": jax.random.normal(ks[4], (C, Cr), jnp.float32) * (1.0 / np.sqrt(Cr)),
        "b_du2": jax.random.normal(ks[5], (C, 1), jnp.float32) * 0.1,
        "w_dw": jax.random.normal(ks[6], (C, 3, 3), jnp.float32) * (1.0 / 3.0),
        "b_dw": jax.random.normal(ks[7], (C, 1), jnp.float32) * 0.1,
    }
    x = jax.random.normal(ks[8], (B, C, H, W), jnp.float32)

    out = ecca_forward(x, params)
    out = jax.block_until_ready(out)

    ref = ecca_reference(x, params)
    # Default (bf16-pass) MXU precision + tanh GELU vs the HIGHEST-precision,
    # erf-GELU reference.
    np.testing.assert_allclose(np.asarray(out), np.asarray(ref),
                               rtol=2e-2, atol=2e-2)
    print("KERNEL_OK")
</pallas_src>

<mosaic_0001>
module attributes {stable_mosaic.version = 11 : i64} {
  func.func @ecca_kernel(%arg0: i32, %arg1: memref<1x16x256xf32, #tpu.memory_space<vmem>>, %arg2: memref<16x16xf32, #tpu.memory_space<vmem>>, %arg3: memref<16x1xf32, #tpu.memory_space<vmem>>, %arg4: memref<16x4xf32, #tpu.memory_space<vmem>>, %arg5: memref<1x4xf32, #tpu.memory_space<vmem>>, %arg6: memref<4x16xf32, #tpu.memory_space<vmem>>, %arg7: memref<1x16xf32, #tpu.memory_space<vmem>>, %arg8: memref<16x9xf32, #tpu.memory_space<vmem>>, %arg9: memref<16x1xf32, #tpu.memory_space<vmem>>, %arg10: memref<5x256xf32, #tpu.memory_space<vmem>>, %arg11: memref<1x16x256xf32, #tpu.memory_space<vmem>>) attributes {dimension_semantics = [#tpu.dimension_semantics<parallel>], iteration_bounds = array<i64: 2>, scalar_prefetch = 0 : i64, scratch_operands = 0 : i64, tpu.core_type = #tpu.core_type<tc>, window_params = [{transform_indices = @transform_0, window_bounds = array<i64: 1, 16, 256>}, {pipeline_mode = #tpu.pipeline_mode<synchronous>, transform_indices = @transform_1, window_bounds = array<i64: 16, 16>}, {pipeline_mode = #tpu.pipeline_mode<synchronous>, transform_indices = @transform_2, window_bounds = array<i64: 16, 1>}, {pipeline_mode = #tpu.pipeline_mode<synchronous>, transform_indices = @transform_3, window_bounds = array<i64: 16, 4>}, {pipeline_mode = #tpu.pipeline_mode<synchronous>, transform_indices = @transform_4, window_bounds = array<i64: 1, 4>}, {pipeline_mode = #tpu.pipeline_mode<synchronous>, transform_indices = @transform_5, window_bounds = array<i64: 4, 16>}, {pipeline_mode = #tpu.pipeline_mode<synchronous>, transform_indices = @transform_6, window_bounds = array<i64: 1, 16>}, {pipeline_mode = #tpu.pipeline_mode<synchronous>, transform_indices = @transform_7, window_bounds = array<i64: 16, 9>}, {pipeline_mode = #tpu.pipeline_mode<synchronous>, transform_indices = @transform_8, window_bounds = array<i64: 16, 1>}, {pipeline_mode = #tpu.pipeline_mode<synchronous>, transform_indices = @transform_9, window_bounds = array<i64: 5, 256>}, {transform_indices = @transform_10, window_bounds = array<i64: 1, 16, 256>}]} {
    %c0 = arith.constant 0 : index
    %c0_0 = arith.constant 0 : index
    %0 = vector.load %arg2[%c0, %c0_0] : memref<16x16xf32, #tpu.memory_space<vmem>>, vector<16x16xf32>
    %c0_1 = arith.constant 0 : index
    %c0_2 = arith.constant 0 : index
    %1 = vector.load %arg3[%c0_1, %c0_2] : memref<16x1xf32, #tpu.memory_space<vmem>>, vector<16x1xf32>
    %c0_3 = arith.constant 0 : index
    %c0_4 = arith.constant 0 : index
    %2 = vector.load %arg4[%c0_3, %c0_4] : memref<16x4xf32, #tpu.memory_space<vmem>>, vector<16x4xf32>
    %c0_5 = arith.constant 0 : index
    %c0_6 = arith.constant 0 : index
    %3 = vector.load %arg5[%c0_5, %c0_6] : memref<1x4xf32, #tpu.memory_space<vmem>>, vector<1x4xf32>
    %c0_7 = arith.constant 0 : index
    %c0_8 = arith.constant 0 : index
    %4 = vector.load %arg6[%c0_7, %c0_8] : memref<4x16xf32, #tpu.memory_space<vmem>>, vector<4x16xf32>
    %c0_9 = arith.constant 0 : index
    %c0_10 = arith.constant 0 : index
    %5 = vector.load %arg7[%c0_9, %c0_10] : memref<1x16xf32, #tpu.memory_space<vmem>>, vector<1x16xf32>
    %c0_11 = arith.constant 0 : index
    %c0_12 = arith.constant 0 : index
    %6 = vector.load %arg8[%c0_11, %c0_12] : memref<16x9xf32, #tpu.memory_space<vmem>>, vector<16x9xf32>
    %c0_13 = arith.constant 0 : index
    %c0_14 = arith.constant 0 : index
    %7 = vector.load %arg9[%c0_13, %c0_14] : memref<16x1xf32, #tpu.memory_space<vmem>>, vector<16x1xf32>
    %c0_15 = arith.constant 0 : index
    %c0_16 = arith.constant 0 : index
    %8 = vector.load %arg10[%c0_15, %c0_16] : memref<5x256xf32, #tpu.memory_space<vmem>>, vector<1x256xf32>
    %c1 = arith.constant 1 : index
    %c0_17 = arith.constant 0 : index
    %9 = vector.load %arg10[%c1, %c0_17] : memref<5x256xf32, #tpu.memory_space<vmem>>, vector<1x256xf32>
    %c2 = arith.constant 2 : index
    %c0_18 = arith.constant 0 : index
    %10 = vector.load %arg10[%c2, %c0_18] : memref<5x256xf32, #tpu.memory_space<vmem>>, vector<1x256xf32>
    %c3 = arith.constant 3 : index
    %c0_19 = arith.constant 0 : index
    %11 = vector.load %arg10[%c3, %c0_19] : memref<5x256xf32, #tpu.memory_space<vmem>>, vector<1x256xf32>
    %c0_20 = arith.constant 0 : index
    %c0_21 = arith.constant 0 : index
    %c0_22 = arith.constant 0 : index
    %12 = vector.load %arg1[%c0_20, %c0_21, %c0_22] : memref<1x16x256xf32, #tpu.memory_space<vmem>>, vector<1x16x256xf32>
    %13 = vector.shape_cast %0 : vector<16x16xf32> to vector<1x16x16xf32>
    "tpu.trace_start"() <{level = 10 : i32, message = "boc,bcp->bop"}> : () -> ()
    %cst = arith.constant dense<0.000000e+00> : vector<1x16x256xf32>
    %14 = tpu.matmul %13, %12, %cst {dimension_numbers = #tpu.dot_dimension_numbers<[2], [1], [1], [2], [0, 0, 0, 1, 1, 2], [0], [0]>} : vector<1x16x16xf32>, vector<1x16x256xf32>, vector<1x16x256xf32> -> vector<1x16x256xf32>
    "tpu.trace_stop"() : () -> ()
    %15 = vector.shape_cast %1 : vector<16x1xf32> to vector<1x16x1xf32>
    %16 = vector.broadcast %15 : vector<1x16x1xf32> to vector<1x16x256xf32>
    %17 = arith.addf %14, %16 : vector<1x16x256xf32>
    %cst_23 = arith.constant 5.000000e-01 : f32
    %18 = vector.broadcast %cst_23 : f32 to vector<1x16x256xf32>
    %19 = arith.mulf %18, %17 : vector<1x16x256xf32>
    %20 = arith.mulf %17, %17 : vector<1x16x256xf32>
    %21 = arith.mulf %20, %17 : vector<1x16x256xf32>
    %cst_24 = arith.constant 4.471500e-02 : f32
    %22 = vector.broadcast %cst_24 : f32 to vector<1x16x256xf32>
    %23 = arith.mulf %22, %21 : vector<1x16x256xf32>
    %24 = arith.addf %17, %23 : vector<1x16x256xf32>
    %cst_25 = arith.constant 0.797884583 : f32
    %25 = vector.broadcast %cst_25 : f32 to vector<1x16x256xf32>
    %26 = arith.mulf %25, %24 : vector<1x16x256xf32>
    %27 = math.tanh %26 : vector<1x16x256xf32>
    %cst_26 = arith.constant 1.000000e+00 : f32
    %28 = vector.broadcast %cst_26 : f32 to vector<1x16x256xf32>
    %29 = arith.addf %28, %27 : vector<1x16x256xf32>
    %30 = arith.mulf %19, %29 : vector<1x16x256xf32>
    %cst_27 = arith.constant dense<0.000000e+00> : vector<1x16xf32>
    %31 = vector.multi_reduction <add>, %30, %cst_27 [2] : vector<1x16x256xf32> to vector<1x16xf32>
    %32 = arith.mulf %30, %30 : vector<1x16x256xf32>
    %cst_28 = arith.constant dense<0.000000e+00> : vector<1x16xf32>
    %33 = vector.multi_reduction <add>, %32, %cst_28 [2] : vector<1x16x256xf32> to vector<1x16xf32>
    %cst_29 = arith.constant 3.906250e-03 : f32
    %34 = vector.broadcast %cst_29 : f32 to vector<1x16xf32>
    %35 = arith.mulf %31, %34 : vector<1x16xf32>
    %cst_30 = arith.constant 3.906250e-03 : f32
    %36 = vector.broadcast %cst_30 : f32 to vector<1x16xf32>
    %37 = arith.mulf %33, %36 : vector<1x16xf32>
    %38 = arith.mulf %35, %35 : vector<1x16xf32>
    %39 = arith.subf %37, %38 : vector<1x16xf32>
    %cst_31 = arith.constant 0.000000e+00 : f32
    %40 = vector.broadcast %cst_31 : f32 to vector<1x16xf32>
    %41 = arith.maximumf %39, %40 : vector<1x16xf32>
    %42 = math.sqrt %41 : vector<1x16xf32>
    %43 = arith.addf %42, %35 : vector<1x16xf32>
    %cst_32 = arith.constant dense<0.000000e+00> : vector<1x4xf32>
    %44 = tpu.matmul %43, %2, %cst_32 {dimension_numbers = #tpu.dot_dimension_numbers<[1], [0], [0], [1], [0, 0, 1, 1], [], []>} : vector<1x16xf32>, vector<16x4xf32>, vector<1x4xf32> -> vector<1x4xf32>
    %45 = arith.addf %44, %3 : vector<1x4xf32>
    %cst_33 = arith.constant 0.000000e+00 : f32
    %46 = vector.broadcast %cst_33 : f32 to vector<1x4xf32>
    %47 = arith.maximumf %45, %46 : vector<1x4xf32>
    %cst_34 = arith.constant dense<0.000000e+00> : vector<1x16xf32>
    %48 = tpu.matmul %47, %4, %cst_34 {dimension_numbers = #tpu.dot_dimension_numbers<[1], [0], [0], [1], [0, 0, 1, 1], [], []>} : vector<1x4xf32>, vector<4x16xf32>, vector<1x16xf32> -> vector<1x16xf32>
    %49 = arith.addf %48, %5 : vector<1x16xf32>
    %50 = arith.negf %49 : vector<1x16xf32>
    %51 = math.exp %50 : vector<1x16xf32>
    %cst_35 = arith.constant 1.000000e+00 : f32
    %52 = vector.broadcast %cst_35 : f32 to vector<1x16xf32>
    %53 = arith.addf %52, %51 : vector<1x16xf32>
    %54 = arith.divf %52, %53 : vector<1x16xf32>
    %c1_i32 = arith.constant 1 : i32
    %55 = tpu.dynamic_rotate %30 by %c1_i32 dim 2 : vector<1x16x256xf32>, i32 -> vector<1x16x256xf32>
    %56 = vector.shape_cast %8 : vector<1x256xf32> to vector<1x1x256xf32>
    %57 = vector.broadcast %56 : vector<1x1x256xf32> to vector<1x16x256xf32>
    %58 = arith.mulf %55, %57 : vector<1x16x256xf32>
    %c255_i32 = arith.constant 255 : i32
    %59 = tpu.dynamic_rotate %30 by %c255_i32 dim 2 : vector<1x16x256xf32>, i32 -> vector<1x16x256xf32>
    %60 = vector.shape_cast %9 : vector<1x256xf32> to vector<1x1x256xf32>
    %61 = vector.broadcast %60 : vector<1x1x256xf32> to vector<1x16x256xf32>
    %62 = arith.mulf %59, %61 : vector<1x16x256xf32>
    %63 = vector.extract_strided_slice %6 {offsets = [0, 0], sizes = [16, 1], strides = [1, 1]} : vector<16x9xf32> to vector<16x1xf32>
    %64 = vector.shape_cast %63 : vector<16x1xf32> to vector<1x16x1xf32>
    %65 = vector.broadcast %64 : vector<1x16x1xf32> to vector<1x16x256xf32>
    %66 = arith.mulf %65, %58 : vector<1x16x256xf32>
    %67 = vector.extract_strided_slice %6 {offsets = [0, 1], sizes = [16, 1], strides = [1, 1]} : vector<16x9xf32> to vector<16x1xf32>
    %68 = vector.shape_cast %67 : vector<16x1xf32> to vector<1x16x1xf32>
    %69 = vector.broadcast %68 : vector<1x16x1xf32> to vector<1x16x256xf32>
    %70 = arith.mulf %69, %30 : vector<1x16x256xf32>
    %71 = arith.addf %66, %70 : vector<1x16x256xf32>
    %72 = vector.extract_strided_slice %6 {offsets = [0, 2], sizes = [16, 1], strides = [1, 1]} : vector<16x9xf32> to vector<16x1xf32>
    %73 = vector.shape_cast %72 : vector<16x1xf32> to vector<1x16x1xf32>
    %74 = vector.broadcast %73 : vector<1x16x1xf32> to vector<1x16x256xf32>
    %75 = arith.mulf %74, %62 : vector<1x16x256xf32>
    %76 = arith.addf %71, %75 : vector<1x16x256xf32>
    %c16_i32 = arith.constant 16 : i32
    %77 = tpu.dynamic_rotate %76 by %c16_i32 dim 2 : vector<1x16x256xf32>, i32 -> vector<1x16x256xf32>
    %78 = vector.shape_cast %10 : vector<1x256xf32> to vector<1x1x256xf32>
    %79 = vector.broadcast %78 : vector<1x1x256xf32> to vector<1x16x256xf32>
    %80 = arith.mulf %79, %77 : vector<1x16x256xf32>
    %81 = vector.extract_strided_slice %6 {offsets = [0, 6], sizes = [16, 1], strides = [1, 1]} : vector<16x9xf32> to vector<16x1xf32>
    %82 = vector.shape_cast %81 : vector<16x1xf32> to vector<1x16x1xf32>
    %83 = vector.broadcast %82 : vector<1x16x1xf32> to vector<1x16x256xf32>
    %84 = arith.mulf %83, %58 : vector<1x16x256xf32>
    %85 = vector.extract_strided_slice %6 {offsets = [0, 7], sizes = [16, 1], strides = [1, 1]} : vector<16x9xf32> to vector<16x1xf32>
    %86 = vector.shape_cast %85 : vector<16x1xf32> to vector<1x16x1xf32>
    %87 = vector.broadcast %86 : vector<1x16x1xf32> to vector<1x16x256xf32>
    %88 = arith.mulf %87, %30 : vector<1x16x256xf32>
    %89 = arith.addf %84, %88 : vector<1x16x256xf32>
    %90 = vector.extract_strided_slice %6 {offsets = [0, 8], sizes = [16, 1], strides = [1, 1]} : vector<16x9xf32> to vector<16x1xf32>
    %91 = vector.shape_cast %90 : vector<16x1xf32> to vector<1x16x1xf32>
    %92 = vector.broadcast %91 : vector<1x16x1xf32> to vector<1x16x256xf32>
    %93 = arith.mulf %92, %62 : vector<1x16x256xf32>
    %94 = arith.addf %89, %93 : vector<1x16x256xf32>
    %c240_i32 = arith.constant 240 : i32
    %95 = tpu.dynamic_rotate %94 by %c240_i32 dim 2 : vector<1x16x256xf32>, i32 -> vector<1x16x256xf32>
    %96 = vector.shape_cast %11 : vector<1x256xf32> to vector<1x1x256xf32>
    %97 = vector.broadcast %96 : vector<1x1x256xf32> to vector<1x16x256xf32>
    %98 = arith.mulf %97, %95 : vector<1x16x256xf32>
    %99 = arith.addf %80, %98 : vector<1x16x256xf32>
    %100 = vector.extract_strided_slice %6 {offsets = [0, 3], sizes = [16, 1], strides = [1, 1]} : vector<16x9xf32> to vector<16x1xf32>
    %101 = vector.shape_cast %100 : vector<16x1xf32> to vector<1x16x1xf32>
    %102 = vector.broadcast %101 : vector<1x16x1xf32> to vector<1x16x256xf32>
    %103 = arith.mulf %102, %58 : vector<1x16x256xf32>
    %104 = vector.extract_strided_slice %6 {offsets = [0, 4], sizes = [16, 1], strides = [1, 1]} : vector<16x9xf32> to vector<16x1xf32>
    %105 = vector.shape_cast %104 : vector<16x1xf32> to vector<1x16x1xf32>
    %106 = vector.broadcast %105 : vector<1x16x1xf32> to vector<1x16x256xf32>
    %107 = arith.mulf %106, %30 : vector<1x16x256xf32>
    %108 = arith.addf %103, %107 : vector<1x16x256xf32>
    %109 = vector.extract_strided_slice %6 {offsets = [0, 5], sizes = [16, 1], strides = [1, 1]} : vector<16x9xf32> to vector<16x1xf32>
    %110 = vector.shape_cast %109 : vector<16x1xf32> to vector<1x16x1xf32>
    %111 = vector.broadcast %110 : vector<1x16x1xf32> to vector<1x16x256xf32>
    %112 = arith.mulf %111, %62 : vector<1x16x256xf32>
    %113 = arith.addf %108, %112 : vector<1x16x256xf32>
    %114 = arith.addf %99, %113 : vector<1x16x256xf32>
    %115 = vector.shape_cast %54 : vector<1x16xf32> to vector<1x16x1xf32>
    %116 = vector.broadcast %115 : vector<1x16x1xf32> to vector<1x16x256xf32>
    %117 = arith.mulf %116, %114 : vector<1x16x256xf32>
    %118 = vector.shape_cast %7 : vector<16x1xf32> to vector<1x16x1xf32>
    %119 = vector.broadcast %118 : vector<1x16x1xf32> to vector<1x16x256xf32>
    %120 = arith.addf %117, %119 : vector<1x16x256xf32>
    %121 = arith.addf %120, %12 : vector<1x16x256xf32>
    %c0_36 = arith.constant 0 : index
    %c0_37 = arith.constant 0 : index
    %c0_38 = arith.constant 0 : index
    %122 = vector.load %arg11[%c0_36, %c0_37, %c0_38] : memref<1x16x256xf32, #tpu.memory_space<vmem>>, vector<1x16x256xf32>
    tpu.vector_store %arg11[%c0_36, %c0_37, %c0_38], %121 {strides = array<i32>} : memref<1x16x256xf32, #tpu.memory_space<vmem>>, vector<1x16x256xf32>,
    return
  }
  func.func @transform_0(%arg0: i32) -> (i32, i32, i32) {
    %c0_i32 = arith.constant 0 : i32
    %c0_i32_0 = arith.constant 0 : i32
    %c0_i32_1 = arith.constant 0 : i32
    return %arg0, %c0_i32, %c0_i32_0 : i32, i32, i32
  }
  func.func @transform_1(%arg0: i32) -> (i32, i32) {
    %c0_i32 = arith.constant 0 : i32
    %c0_i32_0 = arith.constant 0 : i32
    %c0_i32_1 = arith.constant 0 : i32
    return %c0_i32, %c0_i32_0 : i32, i32
  }
  func.func @transform_2(%arg0: i32) -> (i32, i32) {
    %c0_i32 = arith.constant 0 : i32
    %c0_i32_0 = arith.constant 0 : i32
    %c0_i32_1 = arith.constant 0 : i32
    return %c0_i32, %c0_i32_0 : i32, i32
  }
  func.func @transform_3(%arg0: i32) -> (i32, i32) {
    %c0_i32 = arith.constant 0 : i32
    %c0_i32_0 = arith.constant 0 : i32
    %c0_i32_1 = arith.constant 0 : i32
    return %c0_i32, %c0_i32_0 : i32, i32
  }
  func.func @transform_4(%arg0: i32) -> (i32, i32) {
    %c0_i32 = arith.constant 0 : i32
    %c0_i32_0 = arith.constant 0 : i32
    %c0_i32_1 = arith.constant 0 : i32
    return %c0_i32, %c0_i32_0 : i32, i32
  }
  func.func @transform_5(%arg0: i32) -> (i32, i32) {
    %c0_i32 = arith.constant 0 : i32
    %c0_i32_0 = arith.constant 0 : i32
    %c0_i32_1 = arith.constant 0 : i32
    return %c0_i32, %c0_i32_0 : i32, i32
  }
  func.func @transform_6(%arg0: i32) -> (i32, i32) {
    %c0_i32 = arith.constant 0 : i32
    %c0_i32_0 = arith.constant 0 : i32
    %c0_i32_1 = arith.constant 0 : i32
    return %c0_i32, %c0_i32_0 : i32, i32
  }
  func.func @transform_7(%arg0: i32) -> (i32, i32) {
    %c0_i32 = arith.constant 0 : i32
    %c0_i32_0 = arith.constant 0 : i32
    %c0_i32_1 = arith.constant 0 : i32
    return %c0_i32, %c0_i32_0 : i32, i32
  }
  func.func @transform_8(%arg0: i32) -> (i32, i32) {
    %c0_i32 = arith.constant 0 : i32
    %c0_i32_0 = arith.constant 0 : i32
    %c0_i32_1 = arith.constant 0 : i32
    return %c0_i32, %c0_i32_0 : i32, i32
  }
  func.func @transform_9(%arg0: i32) -> (i32, i32) {
    %c0_i32 = arith.constant 0 : i32
    %c0_i32_0 = arith.constant 0 : i32
    %c0_i32_1 = arith.constant 0 : i32
    return %c0_i32, %c0_i32_0 : i32, i32
  }
  func.func @transform_10(%arg0: i32) -> (i32, i32, i32) {
    %c0_i32 = arith.constant 0 : i32
    %c0_i32_0 = arith.constant 0 : i32
    %c0_i32_1 = arith.constant 0 : i32
    return %arg0, %c0_i32, %c0_i32_0 : i32, i32, i32
  }
}

</mosaic_0001>

<bundles_post_ra>
// kernel: tpu_custom_call.1
= control target key start
LH: loop header
LB: loop body
LE: loop exit
PB: predicated region body
PF: predicated region fallthrough
CT: control target
= control target key end

     0   :  { %s1758_s0 = inlined_call_operand.hbm [shape: f32[2,16,256], index: 0, kind: input, shape index: {}]   ;;  %s1759_s1 = inlined_call_operand.vmem [shape: f32[16,16], index: 1, kind: input, shape index: {}]   ;;  %s1760_s2 = inlined_call_operand.vmem [shape: f32[16,1], index: 2, kind: input, shape index: {}]   ;;  %s1761_s3 = inlined_call_operand.vmem [shape: f32[16,4], index: 3, kind: input, shape index: {}]   ;;  %s1762_s4 = inlined_call_operand.vmem [shape: f32[1,4], index: 4, kind: input, shape index: {}]   ;;  %s1763_s5 = inlined_call_operand.hbm [shape: f32[4,16], index: 5, kind: input, shape index: {}]   ;;  %s1764_s6 = inlined_call_operand.vmem [shape: f32[1,16], index: 6, kind: input, shape index: {}]   ;;  %s1765_s7 = inlined_call_operand.vmem [shape: f32[16,9], index: 7, kind: input, shape index: {}]   ;;  %s1766_s8 = inlined_call_operand.vmem [shape: f32[16,1], index: 8, kind: input, shape index: {}]   ;;  %s1767_s9 = inlined_call_operand.vmem [shape: f32[5,256], index: 9, kind: input, shape index: {}]   ;;  %s1768_s10 = inlined_call_operand.hbm [shape: f32[2,16,256], index: 10, kind: output, shape index: {}]  }
   0x1   :  { %1775 = sst [smem:[#allocation17_spill]] %s1763_s5 }
   0x2   :  { %15 = vsyncpa [#allocation3], 0 }
   0x3   :  { %17 = vsyncpa [#allocation3 + $0x1], 0 }
   0x4   :  { %18 = vsyncpa [#allocation6], 0 }
   0x5   :  { %19 = vsyncpa [#allocation4], 0 }
   0x6   :  { %21 = vsyncpa [#allocation4 + $0x1], 0  ;;  %s1362_s13 = smov 0   ;;  %s1364_s14 = smov 0  }
   0x7   :  { %s1366_s15 = smov 0   ;;  %s1368_s16 = smov 0  }
   0x8 LB: > { %1776 = sst [smem:[#allocation11_spill]] %s1276_s13  ;;  %s1383_s17 = sadd.s32 4294967295, %s1288_s16   ;;  %s1288_s16 = sphi %s1368_s16, %s1793_s16   ;;  %s1284_s15 = sphi %s1366_s15, %s1795_s15   ;;  %s1280_s14 = sphi %s1364_s14, %s1797_s14   ;;  %s1276_s13 = sphi %s1362_s13, %s1796_s13  }
   0x9   : > { %1777 = sst [smem:[#allocation12_spill]] %s1284_s15  ;;  %s1017_s18 = sadd.s32 4294967294, %s1288_s16  }
   0xa   : > { %1778 = sst [smem:[#allocation13_spill]] %s1288_s16  ;;  %s1387_s19 = sadd.s32 1, %s1288_s16  }
   0xb   : > { %1779 = sst [smem:[#allocation14_spill]] %s1387_s19  ;;  %s34_s20 = sadd.s32 1, %s1284_s15 }
   0xc   : > { %s31_s21 = ssub.s32 %s1288_s16, %s1387_s19  ;;  %p41_p0 = scmp.ne.s32.totalorder %s1284_s15, %s1280_s14 }
   0xd   : > { %p32_p1 = scmp.eq.s32.totalorder %s31_s21, 0  ;;  %p42_p2 = scmp.eq.s32.totalorder %s1288_s16, 0 }
   0xe   : > { %p47_p3 = scmp.ne.s32.totalorder %s1280_s14, %s1276_s13  ;;  %p48_p4 = scmp.eq.s32.totalorder %s1383_s17, 0 }
   0xf   : > { %s1399_s22 = scalar_select %p32_p1, %s1284_s15, %s34_s20  }
  0x10   : > { %p1401_p5 = por %p42_p2, %p41_p0  ;;  %p1407_p6 = por %p48_p4, %p47_p3 }
  0x11   : > { %1780 = sst [smem:[#allocation15_spill]] %s1399_s22  ;;  %p260_p7 = scmp.eq.s32.totalorder %s1383_s17, 1 }
  0x12   : > { %p266_p8 = scmp.eq.s32.totalorder %s1017_s18, 1  ;;  %p1018_p9 = scmp.ge.s32.totalorder %s1288_s16, 1 }
  0x13   : > { %p273_p10 = scmp.lt.s32.totalorder %s1288_s16, 3  ;;  %p1414_p11 = por %p260_p7, %p41_p0 }
  0x14   : > { %p1418_p12 = por %p266_p8, %p47_p3  ;;  %s1787_s5 = sld [smem:[#allocation17_spill]] }
  0x15   : > { %p1422_p13 = pnand %p1018_p9, %p273_p10  ;;  %s1290_s11 = smov [#allocation5]  }
  0x16   : > { %s1784_s26 = scalar_select %p1418_p12, 1, 0 }
  0x17   : > { %p1054_p1 = pneg %p1422_p13  ;;  %s299_s12 = sshll.u32 %s1290_s11, 4  ;;  %s300_s12 = int_to_ptr.vmem [resolvable:$true] %s299_s12 }
  0x18   : > { %1785 = sst [smem:[#allocation16_spill]] %s1784_s26  ;;  %p1067_p3 = scmp.lt.s32.totalorder %s1288_s16, 2 }
  0x19   : > { %p1055_p2 = pnand %p1054_p1, %p48_p4  ;;  %s322_s18 = sand.u32 1, %s1284_s15  }
  0x1a   : > { %s297_s30 = sshll.u32 %s1787_s5, 4  ;;  %p1438_p7 = pnand %p1067_p3, %p1401_p5  ;;  %s298_s30 = int_to_ptr.hbm [resolvable:$true] %s297_s30 }
  0x1b   : > { %1057 = dma.hbm_to_vmem [thread:$0]  (!%p1055_p2), %s298_s30, 64, %s300_s12, [#allocation6]  }
  0x1c   : > { %s1021_s21 = sshll.u32 %s322_s18, 5  ;;  %s1044_s28 = sshll.u32 %s1288_s16, 5 }
  0x1d   : > { %s331_s22 = scalar_lea.hbm %s1758_s0, %s1044_s28  ;;  %s326_s19 = scalar_lea.vmem [#allocation2], %s1021_s21 }
  0x1e   : > { %s332_s11 = sshll.u32 %s331_s22, 4  ;;  %s334_s26 = sshll.u32 %s326_s19, 4  ;;  %s333_s11 = int_to_ptr.hbm [resolvable:$true] %s332_s11  ;;  %s335_s26 = int_to_ptr.vmem [resolvable:$true] %s334_s26 }
  0x1f   : > { %s323_s13 = scalar_lea.sflag [#allocation3], %s322_s18  ;;  %s1188_s15 = sshra.s32 %s333_s11, 4  ;;  %s1189_s15 = int_to_ptr.hbm [resolvable:$true] %s1188_s15 }
  0x20   : > { %s1190_s23 = scalar_lea.hbm %s1189_s15, 32  ;;  %p1192_p8 = pneg %p1438_p7 }
  0x21   : > { %p1191_p5 = scmp.ne.s32.totalorder %s1189_s15, %s1190_s23  ;;  %s1195_s16 = scalar_lea.hbm %s1758_s0, 64 }
  0x22   : > { %p1196_p1 = scmp.lt.s32.totalorder %s1189_s15, %s1758_s0  ;;  %p1197_p2 = scmp.lt.s32.totalorder %s1195_s16, %s1190_s23 }
  0x23   : > { %p1193_p9 = pnand %p1192_p8, %p1191_p5 }
  0x24   : > { %p1198_p3 = por %p1197_p2, %p1196_p1 }
  0x25   : > { %p1194_p10 = pneg %p1193_p9 }
  0x27   : > { %p1199_p0 = pnand %p1198_p3, %p1194_p10 }
  0x29   : > { %1202 = shalt.err (!%p1199_p0)
}
  0x2a   : > { %s1291_s19 = smov 256   ;;  %s1292_s22 = smov 16  }
  0x2b   : > { %1061 = dma.hbm_to_vmem [thread:$0]  (!%p1438_p7), %s333_s11, 512, %s335_s26, %s323_s13, %s1291_s19, %s1291_s19, %s1292_s22  }
  0x2c   : > { %346 = sbr.rel (%p1422_p13) target bundleno = 800 (0x320), region = 60  ;;  %s1459_s18 = sand.u32 (!%p1422_p13), 1, %s1280_s14  }
  0x2d   : > { %s1025_s15 = sshll.u32 (!%p1422_p13), %s1459_s18, 5  ;;  %s349_s16 = scalar_lea.sflag (!%p1422_p13), [#allocation3], %s1459_s18 }
  0x2e   : > { %s352_s21 = scalar_lea.vmem (!%p1422_p13), [#allocation2], %s1025_s15 }
  0x31   : > { %1263 = dma.done.wait (%p1407_p6), %s349_s16, 512  }
  0x32   : > { %1265 = vsyncadd (%p1407_p6), %s349_s16, 4294966784 }
  0x33   : > { %1267 = dma.done.wait (%p48_p4), [#allocation6], 64  }
  0x34   : > { %1269 = vsyncadd (%p48_p4), [#allocation6], 4294967232  ;;  %v1293_v0 = vmov 0   ;;  %v1475_v1 = vld [vmem:[%s352_s21 + $0x10] sm:$0xff]  ;;  %v1477_v2 = vld [vmem:[%s352_s21 + $0x18] sm:$0xff]  ;;  %vm429_vm0 = vcmask 130048  }
  0x35   : > { %1119 = vset.pattern.permute.xlu0 %v1293_v0  ;;  %1120 = vset.pattern.permute.xlu2 %v1293_v0  ;;  %v1479_v3 = vld [vmem:[%s352_s21] sm:$0xff]  ;;  %v1483_v4 = vld [vmem:[%s352_s21 + $0x8] sm:$0xff]  ;;  %s1294_s30 = smov 1   ;;  %v1295_v58 = vmov 1   ;;  %s1296_s12 = smov 127   ;;  %vm577_vm5 = vcmask 130112  }
  0x36   : > { %450 = vmatpush.msra.mxu0 %v1475_v1  ;;  %473 = vmatpush.msra.mxu1 %v1477_v2  ;;  %v395_v5 = vld [vmem:[%s1759_s1] sm:$0xff]  ;;  %v398_v7 = vld [vmem:[%s1760_s2 + $0x8] sm:$0xff]  ;;  %s1304_s11 = smov 16   ;;  %s1305_s23 = smov 112   ;;  %vm606_vm8 = vcmask 1043456   ;;  %vm602_vm9 = vcmask 31744  }
  0x37   : > { %v397_v6 = vld [vmem:[%s1760_s2] sm:$0xff]  ;;  %v396_v8 = vld [vmem:[%s1759_s1 + $0x8] sm:$0xff]  ;;  %1121 = vset.pattern.permute.xlu1 %v1295_v58  ;;  %s1045_s20 = sshll.u32 %s1383_s17, 5  ;;  %s394_s29 = scalar_lea.vmem [#allocation7], %s1025_s15 }
  0x38   : > { %421 = vperm.xlu0 %1119, %v397_v6   ;;  %451 = vmatpush.msra.mxu0 %v1479_v3  ;;  %v1539_v6 = vld [vmem:[%s1765_s7 + $0x8] sm:$0xff]  ;;  %s931_s5 = sshll.u32 %s394_s29, 4  ;;  %s919_s15 = scalar_lea.sflag [#allocation4], %s1459_s18  ;;  %s932_s5 = int_to_ptr.vmem [resolvable:$true] %s931_s5 }
  0x39   : > { %474 = vmatpush.msra.mxu1 %v1483_v4  ;;  %1031 = vmatmul.msk.f32.vlgmr.msra.gmra.mxu0 %vm429_vm0, %v395_v5  ;;  %s1238_s21 = scalar_lea.hbm %s1768_s10, 64 }
  0x3a   : > { %1033 = vmatmul.msk.f32.vlgmr.msra.gmra.mxu1 %vm429_vm0, %v395_v5  ;;  %v404_v5 = vld [vmem:[%s1765_s7] sm:$0xff] }
  0x40   : > { %426 = vperm.xlu0 %1119, %v398_v7   ;;  %v1297_v7 = vmov 6  }
  0x41   : > { %1032 = vmatmul.msk.f32.gmra.mxu0 %vm429_vm0, %v396_v8 }
  0x42   : > { %1034 = vmatmul.msk.f32.gmra.mxu1 %vm429_vm0, %v396_v8  ;;  %v1298_v8 = vmov 4  }
  0xaa   : > { %v422_v9 = vpop.permute.xlu0 %421 }
  0xb2   : > { %v427_v18 = vpop.permute.xlu0 %426 }
  0xb6   : > { %v453_v10 = vpop.f32.mrf.mxu0 }
  0xb7   : > { %v476_v11 = vpop.f32.mrf.mxu1  ;;  %v454_v12 = vadd.f32 %v453_v10, %v422_v9  ;;  %v1300_v10 = vmov 7  }
  0xb8   : > { %v477_v13 = vadd.f32 %v476_v11, %v422_v9  ;;  %v1299_v9 = vmov 2   ;;  %v1301_v11 = vmov 8  }
  0xb9   : > { %v486_v14 = vmul.f32 %v454_v12, %v454_v12  ;;  %v482_v40 = vmul.f32 0.5, %v454_v12 }
  0xba   : > { %v487_v15 = vmul.f32 %v477_v13, %v477_v13  ;;  %v483_v43 = vmul.f32 0.5, %v477_v13 }
  0xbb   : > { %v490_v16 = vmul.f32 %v486_v14, %v454_v12 }
  0xbc   : > { %v491_v17 = vmul.f32 %v487_v15, %v477_v13 }
  0xbd   : > { %v494_v19 = vmul.f32 0.044715, %v490_v16 }
  0xbe   : > { %v495_v20 = vmul.f32 0.044715, %v491_v17  ;;  %v456_v21 = vpop.f32.mrf.mxu0 }
  0xbf   : > { %v479_v22 = vpop.f32.mrf.mxu1  ;;  %v498_v23 = vadd.f32 %v494_v19, %v454_v12  ;;  %v457_v25 = vadd.f32 %v456_v21, %v427_v18  ;;  %v1302_v12 = vmov 3  }
  0xc0   : > { %v499_v24 = vadd.f32 %v495_v20, %v477_v13  ;;  %v480_v26 = vadd.f32 %v479_v22, %v427_v18  ;;  %v1303_v13 = vmov 5   ;;  %v400_v22 = vld [vmem:[%s1761_s3 + $0x8] sm:$0xff] }
  0xc1   : > { %v502_v27 = vmul.f32 0.7978846, %v498_v23  ;;  %v488_v29 = vmul.f32 %v457_v25, %v457_v25  ;;  %v484_v53 = vmul.f32 0.5, %v457_v25  ;;  %595 = vmatpush.msra.mxu2 %v400_v22 }
  0xc2   : > { %v503_v28 = vmul.f32 0.7978846, %v499_v24  ;;  %v489_v30 = vmul.f32 %v480_v26, %v480_v26  ;;  %v485_v55 = vmul.f32 0.5, %v480_v26 }
  0xc3   : > { %1142 = vtanh.f32 %v502_v27  ;;  %v492_v31 = vmul.f32 %v488_v29, %v457_v25 }
  0xc4   : > { %1144 = vtanh.f32 %v503_v28  ;;  %v493_v32 = vmul.f32 %v489_v30, %v480_v26 }
  0xc5   : > { %v496_v33 = vmul.f32 0.044715, %v492_v31 }
  0xc6   : > { %v497_v34 = vmul.f32 0.044715, %v493_v32 }
  0xc7   : > { %v500_v35 = vadd.f32 %v496_v33, %v457_v25  ;;  %v399_v25 = vld [vmem:[%s1761_s3] sm:$0xff] }
  0xc8   : > { %v501_v36 = vadd.f32 %v497_v34, %v480_v26  ;;  %596 = vmatpush.msra.mxu2 %v399_v25 }
  0xc9   : > { %v1143_v37 = vpop.eup %1142  ;;  %v504_v38 = vmul.f32 0.7978846, %v500_v35 }
  0xca   : > { %v1145_v39 = vpop.eup %1144  ;;  %v510_v41 = vadd.f32 1.0, %v1143_v37  ;;  %v505_v42 = vmul.f32 0.7978846, %v501_v36 }
  0xcb   : > { %v511_v44 = vadd.f32 1.0, %v1145_v39  ;;  %1146 = vtanh.f32 %v504_v38 }
  0xcc   : > { %v1503_v45 = vmul.f32 %v510_v41, %v482_v40  ;;  %1148 = vtanh.f32 %v505_v42 }
  0xcd   : > { %v1505_v46 = vmul.f32 %v511_v44, %v483_v43 }
  0xce   : > { %649 = vrot.lane.b32.xlu0 %v1503_v45, %s1294_s30  ;;  %v524_v47 = vmul.f32 %v1503_v45, %v1503_v45 }
  0xcf   : > { %v518_v48 = vadd.f32 %v1505_v46, %v1503_v45  ;;  %v525_v49 = vmul.f32 %v1505_v46, %v1505_v46 }
  0xd1   : > { %v1147_v50 = vpop.eup %1146  ;;  %519 = vadd.xlane.f32.xlu1 %v518_v48  ;;  %v528_v51 = vadd.f32 %v525_v49, %v524_v47  ;;  %v572_v48 = vlaneseq }
  0xd2   : > { %v1149_v52 = vpop.eup %1148  ;;  %v512_v54 = vadd.f32 1.0, %v1147_v50 }
  0xd3   : > { %v513_v56 = vadd.f32 1.0, %v1149_v52  ;;  %529 = vadd.xlane.f32.xlu2 %v528_v51 }
  0xd4   : > { %v1515_v57 = vmul.f32 %v512_v54, %v484_v53 }
  0xd5   : > { %v1517_v59 = vmul.f32 %v513_v56, %v485_v55  ;;  %v1566_v56 = vand.u32 127, %v572_v48 }
  0xd6   : > { %v526_v60 = vmul.f32 %v1515_v57, %v1515_v57 }
  0xd7   : > { %655 = vrot.lane.b32.xlu0 %v1517_v59, %s1294_s30  ;;  %v521_v61 = vadd.f32 %v1517_v59, %v1515_v57  ;;  %v527_v62 = vmul.f32 %v1517_v59, %v1517_v59  ;;  %vm657_vm6 = vcmp.lt.s32.totalorder %v1566_v56, 1  ;;  %vm679_vm7 = vcmp.lt.s32.totalorder %v1566_v56, 127 }
  0xd8   : > { %vm813_vm14 = vcmp.lt.s32.totalorder %v1566_v56, 112  ;;  %vm747_vm15 = vcmp.lt.s32.totalorder %v1566_v56, 16 }
  0xd9   : > { %522 = vadd.xlane.f32.xlu1 %v521_v61  ;;  %v531_v63 = vadd.f32 %v527_v62, %v526_v60 }
  0xdb   : > { %532 = vadd.xlane.f32.xlu2 %v531_v63 }
  0xdf   : > { %671 = vrot.lane.b32.xlu0 %v1503_v45, %s1296_s12 }
  0xe7   : > { %673 = vrot.lane.b32.xlu0 %v1515_v57, %s1296_s12 }
  0xef   : > { %695 = vperm.xlu0 %1119, %v404_v5  }
  0xf2   : > { %651 = vrot.lane.b32.xlu1 %v1515_v57, %s1294_s30 }
  0xf3   : > { %653 = vrot.lane.b32.xlu2 %v1505_v46, %s1294_s30 }
  0xf7   : > { %1122 = vset.pattern.permute.xlu0 %v1295_v58 }
  0xf8   : > { %712 = vperm.xlu0 %1122, %v1539_v6  }
  0xfa   : > { %677 = vrot.lane.b32.xlu1 %v1517_v59, %s1296_s12 }
  0xfb   : > { %675 = vrot.lane.b32.xlu2 %v1505_v46, %s1296_s12  ;;  %s930_s12 = scalar_lea.hbm %s1768_s10, %s1045_s20 }
  0xfc   : > { %s933_s17 = sshll.u32 %s930_s12, 4  ;;  %s934_s17 = int_to_ptr.hbm [resolvable:$true] %s933_s17 }
  0xfd   : > { %s1232_s28 = sshra.s32 %s934_s17, 4  ;;  %s1233_s28 = int_to_ptr.hbm [resolvable:$true] %s1232_s28 }
  0xfe   : > { %s1234_s19 = scalar_lea.hbm %s1233_s28, 32  ;;  %p1239_p0 = scmp.lt.s32.totalorder %s1233_s28, %s1768_s10 }
  0xff   : > { %p1235_p4 = scmp.ne.s32.totalorder %s1233_s28, %s1234_s19  ;;  %p1240_p7 = scmp.lt.s32.totalorder %s1238_s21, %s1234_s19 }
 0x100   : > { %1126 = vset.pattern.permute.xlu0 %v1297_v7 }
 0x101   : > { %766 = vperm.xlu0 %1126, %v1539_v6   ;;  %p1236_p6 = pnand %p1235_p4, %p1414_p11  ;;  %p1241_p5 = por %p1240_p7, %p1239_p0 }
 0x102   : > { %708 = vperm.xlu1 %1121, %v404_v5  }
 0x103   : > { %700 = vperm.xlu2 %1120, %v1539_v6   ;;  %p1237_p13 = pneg %p1236_p6 }
 0x105   : > { %p1242_p8 = pnand %p1241_p5, %p1237_p13 }
 0x109   : > { %1133 = vset.pattern.permute.xlu0 %v1298_v8 }
 0x10a   : > { %844 = vperm.xlu0 %1133, %v404_v5   ;;  %1124 = vset.pattern.permute.xlu1 %v1299_v9 }
 0x10b   : > { %728 = vperm.xlu1 %1124, %v1539_v6   ;;  %1123 = vset.pattern.permute.xlu2 %v1299_v9  ;;  %v1574_v9 = vld [vmem:[%s1767_s9] ss:$8 sm:$0x3] }
 0x10c   : > { %724 = vperm.xlu2 %1123, %v404_v5  }
 0x113   : > { %1125 = vset.pattern.permute.xlu1 %v1297_v7 }
 0x114   : > { %762 = vperm.xlu1 %1125, %v404_v5   ;;  %1127 = vset.pattern.permute.xlu2 %v1300_v10 }
 0x115   : > { %774 = vperm.xlu2 %1127, %v404_v5  }
 0x11c   : > { %1128 = vset.pattern.permute.xlu1 %v1300_v10 }
 0x11d   : > { %778 = vperm.xlu1 %1128, %v1539_v6   ;;  %1129 = vset.pattern.permute.xlu2 %v1301_v11 }
 0x11e   : > { %790 = vperm.xlu2 %1129, %v404_v5  }
 0x125   : > { %1130 = vset.pattern.permute.xlu1 %v1301_v11 }
 0x126   : > { %794 = vperm.xlu1 %1130, %v1539_v6   ;;  %1131 = vset.pattern.permute.xlu2 %v1302_v12 }
 0x127   : > { %832 = vperm.xlu2 %1131, %v404_v5  }
 0x12e   : > { %1132 = vset.pattern.permute.xlu1 %v1302_v12 }
 0x12f   : > { %836 = vperm.xlu1 %1132, %v1539_v6   ;;  %1134 = vset.pattern.permute.xlu2 %v1298_v8 }
 0x130   : > { %848 = vperm.xlu2 %1134, %v1539_v6  }
 0x137   : > { %1135 = vset.pattern.permute.xlu1 %v1303_v13 }
 0x138   : > { %860 = vperm.xlu1 %1135, %v404_v5   ;;  %1136 = vset.pattern.permute.xlu2 %v1303_v13  ;;  %v575_v5 = vadd.s32 4294967288, %v1566_v56  ;;  %v1028_v13 = vld [vmem:[%s1767_s9 + $0x1] ss:$8 sm:$0x3] }
 0x139   : > { %v686_v22 = vperm.slane %v1028_v13, 1 }
 0x140   : > { %v1551_v15 = vpop.permute.xlu0 %649 }
 0x144   : > { %v520_v14 = vpop.xlane.xlu1 %519 }
 0x145   : > { %v534_v16 = vmul.f32 0.00390625, %v520_v14 }
 0x146   : > { %v530_v17 = vpop.xlane.xlu2 %529 }
 0x147   : > { %v538_v18 = vmul.f32 %v534_v16, %v534_v16  ;;  %v536_v19 = vmul.f32 0.00390625, %v530_v17 }
 0x149   : > { %v540_v20 = vsub.f32 %v536_v19, %v538_v18  ;;  %v1559_v27 = vpop.permute.xlu0 %655  ;;  %v664_v18 = vperm.slane %v1574_v9, 1 }
 0x14b   : > { %v542_v21 = vmax.f32 %v540_v20, 0.0 }
 0x14c   : > { %v523_v23 = vpop.xlane.xlu1 %522 }
 0x14d   : > { %1150 = vrsqrt.f32 %v542_v21  ;;  %v535_v24 = vmul.f32 0.00390625, %v523_v23  ;;  %vm551_vm1 = vcmp.eq.f32.partialorder %v542_v21, inf  ;;  %v554_v52 = vand.u32 2147483648, %v542_v21 }
 0x14e   : > { %v533_v26 = vpop.xlane.xlu2 %532  ;;  %vm553_vm2 = vcmp.eq.f32.partialorder %v542_v21, 0.0 }
 0x14f   : > { %v539_v28 = vmul.f32 %v535_v24, %v535_v24  ;;  %v537_v29 = vmul.f32 0.00390625, %v533_v26 }
 0x151   : > { %v541_v30 = vsub.f32 %v537_v29, %v539_v28  ;;  %v672_v37 = vpop.permute.xlu0 %671 }
 0x153   : > { %v1151_v31 = vpop.eup %1150  ;;  %v543_v32 = vmax.f32 %v541_v30, 0.0 }
 0x154   : > { %v545_v33 = vmul.f32 %v1151_v31, %v542_v21 }
 0x155   : > { %1152 = vrsqrt.f32 %v543_v32  ;;  %vm563_vm3 = vcmp.eq.f32.partialorder %v543_v32, inf  ;;  %v566_v60 = vand.u32 2147483648, %v543_v32  ;;  %vm565_vm4 = vcmp.eq.f32.partialorder %v543_v32, 0.0 }
 0x156   : > { %v654_v34 = vpop.permute.xlu2 %653  ;;  %v546_v35 = vmul.f32 %v1151_v31, %v545_v33 }
 0x157   : > { %v660_v19 = vsel %vm657_vm6, %v654_v34, %v1551_v15  ;;  %v658_v20 = vsel %vm657_vm6, %v1551_v15, %v654_v34 }
 0x158   : > { %v547_v36 = vmul.f32 0.5, %v546_v35  ;;  %v1597_v28 = vmul.f32 %v664_v18, %v658_v20 }
 0x159   : > { %v1561_v51 = vpop.permute.xlu0 %673 }
 0x15a   : > { %v548_v38 = vsub.f32 1.5, %v547_v36 }
 0x15b   : > { %v1153_v39 = vpop.eup %1152 }
 0x15c   : > { %v549_v40 = vmul.f32 %v1151_v31, %v548_v38  ;;  %v557_v41 = vmul.f32 %v1153_v39, %v543_v32 }
 0x15e   : > { %v676_v42 = vpop.permute.xlu2 %675  ;;  %v550_v43 = vmul.f32 %v549_v40, %v542_v21  ;;  %v558_v44 = vmul.f32 %v1153_v39, %v557_v41 }
 0x15f   : > { %v680_v23 = vsel %vm679_vm7, %v672_v37, %v676_v42 }
 0x160   : > { %v559_v47 = vmul.f32 0.5, %v558_v44  ;;  %v552_v49 = vsel %vm551_vm1, %v542_v21, %v550_v43  ;;  %v685_v21 = vperm.slane %v1028_v13, 0 }
 0x161   : > { %v555_v55 = vsel %vm553_vm2, %v554_v52, %v552_v49  ;;  %v696_v14 = vpop.permute.xlu0 %695 }
 0x162   : > { %v560_v50 = vsub.f32 1.5, %v559_v47  ;;  %v568_v63 = vadd.f32 %v555_v55, %v534_v16  ;;  %v663_v16 = vperm.slane %v1574_v9, 0  ;;  %v1599_v29 = vmul.f32 %v685_v21, %v680_v23 }
 0x164   : > { %v1563_v53 = vpop.permute.xlu1 %651  ;;  %v561_v54 = vmul.f32 %v1153_v39, %v560_v50  ;;  %v574_v11 = vperm.slane %v568_v63, %v1566_v56  ;;  %v1595_v25 = vmul.f32 %v663_v16, %v660_v19 }
 0x165   : > { %v659_v33 = vsel %vm657_vm6, %v1563_v53, %v1559_v27 }
 0x166   : > { %v562_v58 = vmul.f32 %v561_v54, %v543_v32  ;;  %v1568_v61 = vpop.permute.xlu2 %700  ;;  %v703_v31 = vmul.f32 %v696_v14, %v1595_v25  ;;  %v1613_v41 = vmul.f32 %v664_v18, %v659_v33 }
 0x168   : > { %v564_v62 = vsel %vm563_vm3, %v543_v32, %v562_v58  ;;  %v704_v32 = vmul.f32 %v696_v14, %v1597_v28  ;;  %v706_v49 = vmul.f32 %v1568_v61, %v1613_v41 }
 0x169   : > { %v567_v7 = vsel %vm565_vm4, %v566_v60, %v564_v62 }
 0x16a   : > { %v569_v8 = vadd.f32 %v567_v7, %v535_v24  ;;  %v682_v24 = vsel %vm679_vm7, %v676_v42, %v672_v37  ;;  %v713_v36 = vpop.permute.xlu0 %712 }
 0x16b   : > { %v1601_v30 = vmul.f32 %v686_v22, %v682_v24  ;;  %v718_v47 = vmul.f32 %v713_v36, %v1517_v59  ;;  %v717_v23 = vmul.f32 %v713_v36, %v1515_v57 }
 0x16c   : > { %v678_v10 = vpop.permute.xlu1 %677  ;;  %v576_v12 = vperm.slane %v569_v8, %v575_v5 }
 0x16d   : > { %v683_v42 = vsel %vm679_vm7, %v678_v10, %v1561_v51  ;;  %v722_v55 = vadd.f32 %v718_v47, %v706_v49  ;;  %v681_v18 = vsel %vm679_vm7, %v1561_v51, %v678_v10 }
 0x16e   : > { %v578_v17 = vsel %vm577_vm5, %v576_v12, %v574_v11  ;;  %v725_v26 = vpop.permute.xlu2 %724  ;;  %v1623_v50 = vmul.f32 %v686_v22, %v683_v42  ;;  %v661_v11 = vsel %vm657_vm6, %v1559_v27, %v1563_v53  ;;  %v1643_v24 = vmul.f32 %v685_v21, %v681_v18 }
 0x16f   : > { %1035 = vmatmul.msk.f32.vlgmr.msra.gmra.mxu2 %vm429_vm0, %v578_v17  ;;  %v731_v37 = vmul.f32 %v725_v26, %v1599_v29  ;;  %v732_v38 = vmul.f32 %v725_v26, %v1601_v30  ;;  %v1640_v19 = vmul.f32 %v663_v16, %v661_v11  ;;  %v406_v11 = vld [vmem:[%s1766_s8] sm:$0xff] }
 0x171   : > { %v705_v27 = vmul.f32 %v1568_v61, %v1640_v19 }
 0x173   : > { %v767_v51 = vpop.permute.xlu0 %766 }
 0x174   : > { %v709_v15 = vpop.permute.xlu1 %708  ;;  %v771_v21 = vmul.f32 %v767_v51, %v1640_v19 }
 0x175   : > { %v715_v34 = vmul.f32 %v709_v15, %v1503_v45  ;;  %v716_v35 = vmul.f32 %v709_v15, %v1505_v46 }
 0x176   : > { %v775_v52 = vpop.permute.xlu2 %774 }
 0x177   : > { %v719_v39 = vadd.f32 %v715_v34, %v703_v31  ;;  %v720_v40 = vadd.f32 %v716_v35, %v704_v32  ;;  %v781_v5 = vmul.f32 %v775_v52, %v1503_v45  ;;  %v782_v7 = vmul.f32 %v775_v52, %v1505_v46 }
 0x178   : > { %v721_v31 = vadd.f32 %v717_v23, %v705_v27  ;;  %v772_v32 = vmul.f32 %v767_v51, %v1613_v41 }
 0x179   : > { %v736_v43 = vadd.f32 %v732_v38, %v720_v40  ;;  %v735_v44 = vadd.f32 %v731_v37, %v719_v39 }
 0x17b   : > { %743 = vrot.lane.b32.xlu0 %v736_v43, %s1304_s11  ;;  %739 = vrot.lane.b32.xlu2 %v735_v44, %s1304_s11 }
 0x17c   : > { %v845_v42 = vpop.permute.xlu0 %844 }
 0x17d   : > { %v729_v54 = vpop.permute.xlu1 %728  ;;  %v851_v47 = vmul.f32 %v845_v42, %v1503_v45  ;;  %v852_v49 = vmul.f32 %v845_v42, %v1505_v46  ;;  %v401_v45 = vld [vmem:[%s1762_s4] sm:$0x1] }
 0x17e   : > { %v734_v58 = vmul.f32 %v729_v54, %v1623_v50  ;;  %v791_v62 = vpop.permute.xlu2 %790  ;;  %v733_v53 = vmul.f32 %v729_v54, %v1643_v24 }
 0x17f   : > { %v797_v12 = vmul.f32 %v791_v62, %v1599_v29  ;;  %v798_v13 = vmul.f32 %v791_v62, %v1601_v30 }
 0x180   : > { %v738_v60 = vadd.f32 %v734_v58, %v722_v55  ;;  %v737_v15 = vadd.f32 %v733_v53, %v721_v31 }
 0x183   : > { %745 = vrot.lane.b32.xlu2 %v738_v60, %s1304_s11 }
 0x186   : > { %v763_v63 = vpop.permute.xlu1 %762  ;;  %v833_v40 = vpop.permute.xlu2 %832 }
 0x187   : > { %v769_v8 = vmul.f32 %v763_v63, %v1595_v25  ;;  %v770_v9 = vmul.f32 %v763_v63, %v1597_v28  ;;  %v839_v43 = vmul.f32 %v833_v40, %v1595_v25  ;;  %v840_v44 = vmul.f32 %v833_v40, %v1597_v28 }
 0x189   : > { %v785_v14 = vadd.f32 %v781_v5, %v769_v8  ;;  %v786_v17 = vadd.f32 %v782_v7, %v770_v9  ;;  %v855_v54 = vadd.f32 %v851_v47, %v839_v43  ;;  %v856_v55 = vadd.f32 %v852_v49, %v840_v44  ;;  %v403_v5 = vld [vmem:[%s1764_s6] sm:$0x1] }
 0x18b   : > { %v802_v20 = vadd.f32 %v798_v13, %v786_v17  ;;  %v801_v22 = vadd.f32 %v797_v12, %v785_v14 }
 0x18d   : > { %809 = vrot.lane.b32.xlu1 %v802_v20, %s1305_s23  ;;  %805 = vrot.lane.b32.xlu0 %v801_v22, %s1305_s23 }
 0x18e   : > { %v849_v51 = vpop.permute.xlu2 %848 }
 0x18f   : > { %v779_v26 = vpop.permute.xlu1 %778 }
 0x190   : > { %v783_v10 = vmul.f32 %v779_v26, %v1515_v57  ;;  %v784_v16 = vmul.f32 %v779_v26, %v1517_v59 }
 0x192   : > { %v787_v34 = vadd.f32 %v783_v10, %v771_v21  ;;  %v788_v35 = vadd.f32 %v784_v16, %v772_v32 }
 0x195   : > { %741 = vrot.lane.b32.xlu1 %v737_v15, %s1304_s11  ;;  %v407_v15 = vld [vmem:[%s1766_s8 + $0x8] sm:$0xff] }
 0x198   : > { %v795_v33 = vpop.permute.xlu1 %794 }
 0x199   : > { %v799_v61 = vmul.f32 %v795_v33, %v1643_v24  ;;  %v800_v36 = vmul.f32 %v795_v33, %v1623_v50 }
 0x19b   : > { %v803_v37 = vadd.f32 %v799_v61, %v787_v34  ;;  %v804_v38 = vadd.f32 %v800_v36, %v788_v35  ;;  %v1030_v35 = vld [vmem:[%s1767_s9 + $0x3] ss:$8 sm:$0x3]  ;;  %v1029_v61 = vld [vmem:[%s1767_s9 + $0x2] ss:$8 sm:$0x3] }
 0x19c   : > { %v820_v36 = vperm.slane %v1030_v35, 1  ;;  %v753_v40 = vperm.slane %v1029_v61, 0  ;;  %v754_v42 = vperm.slane %v1029_v61, 1 }
 0x19d   : > { %811 = vrot.lane.b32.xlu0 %v804_v38, %s1305_s23  ;;  %807 = vrot.lane.b32.xlu2 %v803_v37, %s1305_s23 }
 0x1a1   : > { %v1655_v39 = vpop.permute.xlu1 %836 }
 0x1a5   : > { %864 = vperm.xlu2 %1136, %v1539_v6   ;;  %v402_v6 = vld [vmem:[#allocation5] sm:$0xf] }
 0x1a6   : > { %1036 = vmatpush.msk.msra.mxu3 %vm606_vm8, %v402_v6 }
 0x1aa   : > { %v861_v52 = vpop.permute.xlu1 %860 }
 0x1ab   : > { %v867_v58 = vmul.f32 %v861_v52, %v1599_v29  ;;  %v868_v60 = vmul.f32 %v861_v52, %v1601_v30  ;;  %v881_v29 = vshrl.u32 %v572_v48, 7 }
 0x1ad   : > { %v1664_v62 = vadd.f32 %v867_v58, %v855_v54  ;;  %v1666_v63 = vadd.f32 %v868_v60, %v856_v55  ;;  %1139 = vset.pattern.permute.xlu2 %v1293_v0  ;;  %v888_v30 = vadd.s32 8, %v881_v29  ;;  %1137 = vset.pattern.permute.xlu1 %v881_v29 }
 0x1ae   : > { %898 = vperm.xlu2 %1139, %v406_v11   ;;  %v854_v11 = vmul.f32 %v849_v51, %v1517_v59 }
 0x1af   : > { %1138 = vset.pattern.permute.xlu0 %v888_v30  ;;  %v841_v30 = vmul.f32 %v1655_v39, %v1640_v19 }
 0x1d5   : > { %v740_v10 = vpop.permute.xlu2 %739 }
 0x1dd   : > { %v746_v16 = vpop.permute.xlu2 %745 }
 0x1ed   : > { %v744_v21 = vpop.permute.xlu0 %743 }
 0x1ee   : > { %v748_v43 = vsel %vm747_vm15, %v740_v10, %v744_v21  ;;  %v750_v44 = vsel %vm747_vm15, %v744_v21, %v740_v10 }
 0x1ef   : > { %v757_v58 = vmul.f32 %v753_v40, %v750_v44  ;;  %v758_v60 = vmul.f32 %v754_v42, %v748_v43 }
 0x1f2   : > { %v598_v46 = vpop.f32.mrf.mxu2 }
 0x1f3   : > { %v599_v25 = vadd.f32 %v598_v46, %v401_v45 }
 0x1f5   : > { %v601_v28 = vmax.f32 %v599_v25, 0.0 }
 0x1f7   : > { %1037 = vmatmul.msk.f32.vlgmr.msra.gmra.mxu3 %vm602_vm9, %v601_v28  ;;  %v808_v32 = vpop.permute.xlu2 %807 }
 0x1ff   : > { %v810_v33 = vpop.permute.xlu1 %809  ;;  %v806_v34 = vpop.permute.xlu0 %805 }
 0x200   : > { %v814_v37 = vsel %vm813_vm14, %v806_v34, %v810_v33  ;;  %v816_v38 = vsel %vm813_vm14, %v810_v33, %v806_v34  ;;  %v865_v47 = vpop.permute.xlu2 %864 }
 0x201   : > { %v824_v52 = vmul.f32 %v820_v36, %v816_v38  ;;  %v870_v56 = vmul.f32 %v865_v47, %v1623_v50 }
 0x203   : > { %v828_v45 = vadd.f32 %v824_v52, %v758_v60 }
 0x207   : > { %v742_v54 = vpop.permute.xlu1 %741 }
 0x208   : > { %v749_v28 = vsel %vm747_vm15, %v742_v54, %v746_v16  ;;  %v751_v29 = vsel %vm747_vm15, %v746_v16, %v742_v54 }
 0x209   : > { %v760_v19 = vmul.f32 %v754_v42, %v749_v28 }
 0x20f   : > { %v812_v55 = vpop.permute.xlu0 %811 }
 0x210   : > { %v815_v46 = vsel %vm813_vm14, %v808_v32, %v812_v55  ;;  %v817_v25 = vsel %vm813_vm14, %v812_v55, %v808_v32 }
 0x27a   : > { %v627_v7 = vpop.f32.mrf.mxu3 }
 0x27b   : > { %v628_v8 = vadd.f32 %v627_v7, %v403_v5  ;;  %v842_v5 = vmul.f32 %v1655_v39, %v1613_v41 }
 0x27d   : > { %v1038_v9 = vmul.f32 -1.442695, %v628_v8  ;;  %v826_v8 = vmul.f32 %v820_v36, %v817_v25 }
 0x27f   : > { %1154 = vpow2.f32 %v1038_v9  ;;  %v853_v9 = vmul.f32 %v849_v51, %v1515_v57  ;;  %v858_v57 = vadd.f32 %v854_v11, %v842_v5  ;;  %v830_v59 = vadd.f32 %v826_v8, %v760_v19 }
 0x285   : > { %v1155_v12 = vpop.eup %1154 }
 0x286   : > { %v633_v13 = vadd.f32 1.0, %v1155_v12 }
 0x288   : > { %1156 = vrcp.f32 %v633_v13  ;;  %v645_v18 = vand.u32 2147483648, %v633_v13  ;;  %v643_v22 = vand.u32 2147483647, %v633_v13  ;;  %vm639_vm11 = vweird.f32 %v633_v13 }
 0x28a   : > { %v646_v27 = vor.u32 1.1754944e-38, %v645_v18  ;;  %vm644_vm13 = vcmp.eq.f32.partialorder %v643_v22, 8.507059e+37  ;;  %v899_v18 = vpop.permute.xlu2 %898 }
 0x28e   : > { %v1157_v48 = vpop.eup %1156 }
 0x28f   : > { %v635_v14 = vmul.f32 %v1157_v48, %v633_v13  ;;  %vm640_vm10 = vweird.f32 %v1157_v48  ;;  %v876_v13 = vadd.f32 %v1666_v63, %v828_v45  ;;  %v874_v63 = vadd.f32 %v870_v56, %v858_v57 }
 0x290   : > { %vm641_vm12 = vmor %vm639_vm11, %vm640_vm10 }
 0x291   : > { %v636_v17 = vsub.f32 1.0, %v635_v14  ;;  %v759_v14 = vmul.f32 %v753_v40, %v751_v29 }
 0x293   : > { %v637_v20 = vmul.f32 %v1157_v48, %v636_v17 }
 0x295   : > { %v638_v23 = vadd.f32 %v1157_v48, %v637_v20  ;;  %v857_v20 = vadd.f32 %v853_v9, %v841_v30 }
 0x297   : > { %v642_v53 = vsel %vm641_vm12, %v1157_v48, %v638_v23  ;;  %v869_v48 = vmul.f32 %v865_v47, %v1643_v24 }
 0x298   : > { %v647_v26 = vsel %vm644_vm13, %v646_v27, %v642_v53 }
 0x299   : > { %v879_v31 = vperm.slane %v647_v26, 0  ;;  %v873_v27 = vadd.f32 %v869_v48, %v857_v20 }
 0x29b   : > { %884 = vperm.xlu1 %1137, %v879_v31   ;;  %890 = vperm.xlu0 %1138, %v879_v31   ;;  %v878_v31 = vadd.f32 %v874_v63, %v830_v59 }
 0x2a3   : > { %1140 = vset.pattern.permute.xlu1 %v1293_v0  ;;  %1141 = vset.pattern.permute.xlu0 %v1293_v0  ;;  %v819_v0 = vperm.slane %v1030_v35, 0 }
 0x2a4   : > { %903 = vperm.xlu1 %1140, %v407_v15  }
 0x2a5   : > { %v823_v49 = vmul.f32 %v819_v0, %v814_v37  ;;  %v825_v7 = vmul.f32 %v819_v0, %v815_v46 }
 0x2a7   : > { %v827_v6 = vadd.f32 %v823_v49, %v757_v58  ;;  %v829_v22 = vadd.f32 %v825_v7, %v759_v14 }
 0x2a9   : > { %v875_v12 = vadd.f32 %v1664_v62, %v827_v6  ;;  %v877_v26 = vadd.f32 %v873_v27, %v829_v22 }
 0x30d   : > { %v885_v17 = vpop.permute.xlu1 %884  ;;  %v891_v24 = vpop.permute.xlu0 %890 }
 0x30e   : > { %v892_v41 = vmul.f32 %v885_v17, %v875_v12  ;;  %v893_v39 = vmul.f32 %v885_v17, %v876_v13  ;;  %v894_v15 = vmul.f32 %v891_v24, %v877_v26  ;;  %v895_v51 = vmul.f32 %v891_v24, %v878_v31 }
 0x310   : > { %v906_v23 = vadd.f32 %v899_v18, %v892_v41  ;;  %v907_v62 = vadd.f32 %v899_v18, %v893_v39 }
 0x312   : > { %v910_v53 = vadd.f32 %v906_v23, %v1479_v3  ;;  %v911_v50 = vadd.f32 %v907_v62, %v1483_v4 }
 0x314   : > { %914 = vst [vmem:[%s394_s29] sm:$0xff] %v910_v53 }
 0x315   : > { %915 = vst [vmem:[%s394_s29 + $0x8] sm:$0xff] %v911_v50 }
 0x316   : > { %v904_v10 = vpop.permute.xlu1 %903 }
 0x317   : > { %v908_v16 = vadd.f32 %v904_v10, %v894_v15  ;;  %v909_v3 = vadd.f32 %v904_v10, %v895_v51 }
 0x319   : > { %v912_v4 = vadd.f32 %v908_v16, %v1475_v1  ;;  %v913_v21 = vadd.f32 %v909_v3, %v1477_v2 }
 0x31b   : > { %916 = vst [vmem:[%s394_s29 + $0x10] sm:$0xff] %v912_v4 }
 0x31c   : > { %917 = vst [vmem:[%s394_s29 + $0x18] sm:$0xff] %v913_v21 }
 0x31d   : > { %1245 = shalt.err (!%p1242_p8)
}
 0x31e   : > { %s1306_s18 = smov 256  }
 0x31f   : > { %1052 = dma.vmem_to_hbm [thread:$0]  (%p1414_p11), %s932_s5, 512, %s934_s17, %s919_s15, %s1306_s18, %s1306_s18, %s1304_s11  }
 0x320 PF: > { %s1789_s26 = sld [smem:[#allocation11_spill]] }
 0x321   : > { %s1791_s20 = sld [smem:[#allocation13_spill]] }
 0x326   : > { %s948_s29 = sand.u32 1, %s1789_s26  }
 0x327   : > { %p1792_p9 = scmp.ge.s32.totalorder %s1791_s20, 2  ;;  %s949_s23 = scalar_lea.sflag [#allocation4], %s948_s29 }
 0x329   : > { %p1063_p10 = pnand %p1792_p9, %p1418_p12 }
 0x32b   : > { %p1064_p1 = pneg %p1063_p10 }
 0x32d   : > { %1271 = dma.done.wait (%p1064_p1), %s949_s23, 512  }
 0x32e   : > { %1273 = vsyncadd (%p1064_p1), %s949_s23, 4294966784  ;;  %s1793_s16 = sld [smem:[#allocation14_spill]]  ;;  %s1796_s13 = smov %s1280_s14 }
 0x32f   : > { %s1794_s30 = sld [smem:[#allocation12_spill]] }
 0x330   : > { %s1795_s15 = sld [smem:[#allocation15_spill]] }
 0x334   : > { %p24_p2 = scmp.ge.s32.totalorder %s1793_s16, 4  }
 0x335   : > { %s1797_s14 = smov %s1794_s30 }
 0x336   :  { %26 = sbr.rel (!%p24_p2) target bundleno = 8 (0x8), region = 112 }
 0x33b   :  { %955 = vsyncpa [#allocation3], 1 }
 0x33c   :  { %957 = vsyncpa [#allocation3 + $0x1], 1 }
 0x33d   :  { %958 = vsyncpa [#allocation6], 1 }
 0x33e   :  { %959 = vsyncpa [#allocation4], 1 }
 0x33f   :  { %961 = vsyncpa [#allocation4 + $0x1], 1 }

</bundles_post_ra>
